<compile_context>
chip_gen: v5e
topology: v5e:2x2
jax: 0.10.0
libtpu: 0.0.40
codegen_flags: <defaults>
</compile_context>

<pallas_src>
import math
import jax
import jax.numpy as jnp
from jax.experimental import pallas as pl
from jax.experimental.pallas import tpu as pltpu


# --------------------------------------------------------------------------
# Helpers
# --------------------------------------------------------------------------
def _round_up(x, m):
    return ((x + m - 1) // m) * m


def _pad_to(a, shape):
    pads = [(0, s - d) for d, s in zip(a.shape, shape)]
    if any(p[1] for p in pads):
        return jnp.pad(a, pads)
    return a


def _vmem_budget():
    """Usable VMEM bytes for this generation (leaves ~1/8 compiler headroom)."""
    cap = 64 * 1024 * 1024  # conservative default = v7x physical per-core VMEM
    try:
        cap = int(pltpu.get_tpu_info().vmem_capacity_bytes)
    except Exception:
        pass
    return (cap // 8) * 7    # v5e/v6e: 112 MiB, v7x: 56 MiB


def _pick_row_tile(n_pad, candidates=(512, 256, 128)):
    """Largest 128-multiple tile dividing n_pad that leaves >=2 row tiles."""
    best = None
    for c in candidates:
        if c <= n_pad and n_pad % c == 0:
            if best is None:
                best = c
            if n_pad // c >= 2:
                return c
    return best if best is not None else n_pad


def _plan_aggregate(n_pad, f_out_pad, out_itemsize, budget):
    """Pick a tiling plan for out = relu(adj @ support + b)."""
    cd = 2  # bf16 compute dtype
    sup_bytes = n_pad * f_out_pad * cd

    def tm_candidates():
        for c in (512, 256, 128):
            if c <= n_pad and n_pad % c == 0:
                # keep >=2 row tiles (feeds both v7x TensorCores) when possible
                if n_pad >= 256 and n_pad // c < 2:
                    continue
                yield c

    # Plan A: collapsed reduction (one long-K dot per row tile), support resident.
    for tm in tm_candidates():
        need = (2 * tm * n_pad * cd            # adj row-slab, double-buffered
                + 2 * sup_bytes                # resident support (counted 2x)
                + 2 * tm * f_out_pad * out_itemsize
                + 4096)                        # bias + slack
        if need <= budget:
            return dict(kind="collapsed", tm=tm)

    # Plan B: tiled reduction; keep support resident if it fits, big tk.
    sup_resident = (2 * sup_bytes) <= budget // 2
    for tm in tm_candidates():
        for tk in (2048, 1024, 512, 256, 128):
            if tk > n_pad or n_pad % tk:
                continue
            need = (2 * tm * tk * cd
                    + tm * f_out_pad * 4        # f32 accumulator scratch
                    + 2 * tm * f_out_pad * out_itemsize
                    + 4096)
            need += (2 * sup_bytes) if sup_resident else (2 * tk * f_out_pad * cd)
            if need <= budget:
                return dict(kind="tiled", tm=tm, tk=tk, sup_resident=sup_resident)

    # Last resort: smallest tiles, streamed support.
    return dict(kind="tiled", tm=128, tk=128, sup_resident=False)


# --------------------------------------------------------------------------
# Kernel 1: support = x @ W   (tiled over node rows, computed ONCE per layer)
# --------------------------------------------------------------------------
def _support_kernel(x_ref, w_ref, o_ref):
    o_ref[...] = jnp.dot(
        x_ref[...], w_ref[...], preferred_element_type=jnp.float32
    ).astype(o_ref.dtype)


def _support(x_p, w_p, plan_budget, vmem_limit, compute_dtype):
    n_pad, f_in_pad = x_p.shape
    f_out_pad = w_p.shape[1]
    cd = jnp.dtype(compute_dtype).itemsize

    ts = _pick_row_tile(n_pad)
    while ts > 128 and (2 * ts * f_in_pad * cd
                        + 2 * f_in_pad * f_out_pad * cd
                        + 2 * ts * f_out_pad * cd) > plan_budget:
        ts //= 2

    return pl.pallas_call(
        _support_kernel,
        out_shape=jax.ShapeDtypeStruct((n_pad, f_out_pad), compute_dtype),
        grid=(n_pad // ts,),
        in_specs=[
            pl.BlockSpec((ts, f_in_pad), lambda i: (i, 0)),
            pl.BlockSpec((f_in_pad, f_out_pad), lambda i: (0, 0)),
        ],
        out_specs=pl.BlockSpec((ts, f_out_pad), lambda i: (i, 0)),
        compiler_params=pltpu.CompilerParams(
            dimension_semantics=("parallel",),
            vmem_limit_bytes=vmem_limit,
        ),
    )(x_p, w_p)


# --------------------------------------------------------------------------
# Kernel 2: out = relu(adj @ support + b)
# --------------------------------------------------------------------------
def _aggregate_collapsed_kernel(adj_ref, sup_ref, b_ref, o_ref):
    out = jnp.dot(adj_ref[...], sup_ref[...], preferred_element_type=jnp.float32)
    o_ref[...] = jnp.maximum(out + b_ref[...], 0.0).astype(o_ref.dtype)


def _make_tiled_aggregate_kernel(tk, sup_resident):
    def kernel(adj_ref, sup_ref, b_ref, o_ref, acc_ref):
        k = pl.program_id(1)

        @pl.when(k == 0)
        def _init():
            acc_ref[...] = jnp.zeros_like(acc_ref)

        if sup_resident:
            off = pl.multiple_of(k * tk, 128)
            sup = sup_ref[pl.ds(off, tk), :]
        else:
            sup = sup_ref[...]

        acc_ref[...] += jnp.dot(adj_ref[...], sup,
                                preferred_element_type=jnp.float32)

        @pl.when(k == pl.num_programs(1) - 1)
        def _finalize():
            o_ref[...] = jnp.maximum(acc_ref[...] + b_ref[...], 0.0
                                     ).astype(o_ref.dtype)

    return kernel


def _aggregate(adj_p, sup_p, b_p, plan_budget, vmem_limit, out_dtype):
    n_pad = adj_p.shape[0]
    f_out_pad = sup_p.shape[1]
    plan = _plan_aggregate(n_pad, f_out_pad, jnp.dtype(out_dtype).itemsize,
                           plan_budget)

    if plan["kind"] == "collapsed":
        tm = plan["tm"]
        return pl.pallas_call(
            _aggregate_collapsed_kernel,
            out_shape=jax.ShapeDtypeStruct((n_pad, f_out_pad), out_dtype),
            grid=(n_pad // tm,),
            in_specs=[
                pl.BlockSpec((tm, n_pad), lambda i: (i, 0)),           # adj row-slab
                pl.BlockSpec((n_pad, f_out_pad), lambda i: (0, 0)),    # support (resident)
                pl.BlockSpec((1, f_out_pad), lambda i: (0, 0)),        # bias (resident)
            ],
            out_specs=pl.BlockSpec((tm, f_out_pad), lambda i: (i, 0)),
            compiler_params=pltpu.CompilerParams(
                dimension_semantics=("parallel",),
                vmem_limit_bytes=vmem_limit,
            ),
        )(adj_p, sup_p, b_p)

    tm, tk = plan["tm"], plan["tk"]
    sup_resident = plan["sup_resident"]
    if sup_resident:
        sup_spec = pl.BlockSpec((n_pad, f_out_pad), lambda i, k: (0, 0))
    else:
        sup_spec = pl.BlockSpec((tk, f_out_pad), lambda i, k: (k, 0))

    return pl.pallas_call(
        _make_tiled_aggregate_kernel(tk, sup_resident),
        out_shape=jax.ShapeDtypeStruct((n_pad, f_out_pad), out_dtype),
        grid=(n_pad // tm, n_pad // tk),
        in_specs=[
            pl.BlockSpec((tm, tk), lambda i, k: (i, k)),               # adj tile
            sup_spec,                                                   # support
            pl.BlockSpec((1, f_out_pad), lambda i, k: (0, 0)),         # bias
        ],
        # same output block across k -> accumulator / output stay resident
        out_specs=pl.BlockSpec((tm, f_out_pad), lambda i, k: (i, 0)),
        scratch_shapes=[pltpu.VMEM((tm, f_out_pad), jnp.float32)],
        compiler_params=pltpu.CompilerParams(
            dimension_semantics=("parallel", "arbitrary"),
            vmem_limit_bytes=vmem_limit,
        ),
    )(adj_p, sup_p, b_p)


# --------------------------------------------------------------------------
# One GraphConvolution layer (+ ReLU) on pre-padded node dim
# --------------------------------------------------------------------------
def _gcn_layer_padded(x_p, w, b, adj_p, plan_budget, vmem_limit,
                      compute_dtype, out_dtype):
    f_in, f_out = w.shape
    f_in_pad = x_p.shape[1]
    f_out_pad = _round_up(f_out, 128)

    w_p = _pad_to(w, (f_in_pad, f_out_pad)).astype(compute_dtype)
    b_p = _pad_to(b.reshape(1, f_out), (1, f_out_pad)).astype(jnp.float32)

    sup_p = _support(x_p, w_p, plan_budget, vmem_limit, compute_dtype)
    return _aggregate(adj_p, sup_p, b_p, plan_budget, vmem_limit, out_dtype)


# --------------------------------------------------------------------------
# Parameter init matching GraphConvolution.reset_parameters()
# --------------------------------------------------------------------------
def init_gc_params(key, in_features, out_features):
    stdv = 1.0 / math.sqrt(out_features)
    k_w, k_b = jax.random.split(key)
    w = jax.random.uniform(k_w, (in_features, out_features), jnp.float32,
                           -stdv, stdv)
    b = jax.random.uniform(k_b, (1, out_features), jnp.float32, -stdv, stdv)
    return w, b


# --------------------------------------------------------------------------
# Full GCN forward
# --------------------------------------------------------------------------
def gcn_forward(x, adj, params, dropout_rate, compute_dtype=jnp.bfloat16,
                plan_budget=None):
    (w1, b1), (w2, b2) = params
    n, f_in = x.shape
    n_out = w2.shape[1]

    vmem_limit = _vmem_budget()
    budget = vmem_limit if plan_budget is None else plan_budget

    # Tight, lane-dense padding: node dim to 128, feature dims to 128.
    n_pad = _round_up(n, 128)
    f_in_pad = _round_up(f_in, 128)

    adj_p = _pad_to(adj, (n_pad, n_pad)).astype(compute_dtype)
    x_p = _pad_to(x, (n_pad, f_in_pad)).astype(compute_dtype)

    # gc1 + ReLU; h stays bf16 & padded (fed straight into gc2's support matmul)
    h_p = _gcn_layer_padded(x_p, w1, b1, adj_p, budget, vmem_limit,
                            compute_dtype, compute_dtype)
    # TODO(synk): F.dropout(h, p, training=True) not implemented (eval == identity)
    # gc2 + ReLU; final output in float32
    y_p = _gcn_layer_padded(h_p, w2, b2, adj_p, budget, vmem_limit,
                            compute_dtype, jnp.float32)

    return y_p[:n, :n_out]


# --------------------------------------------------------------------------
# Self-test
# --------------------------------------------------------------------------
def _ref_forward(x, adj, params):
    (w1, b1), (w2, b2) = params
    h = jnp.maximum(adj @ (x @ w1) + b1, 0.0)
    return jnp.maximum(adj @ (h @ w2) + b2, 0.0)


def _make_case(key, n_nodes, n_feat, n_hid, n_out):
    k_x, k_adj, k_p1, k_p2 = jax.random.split(key, 4)
    x = jax.random.normal(k_x, (n_nodes, n_feat), jnp.float32)
    a = jax.random.uniform(k_adj, (n_nodes, n_nodes), jnp.float32)
    a = (a + a.T) * 0.5 + jnp.eye(n_nodes, dtype=jnp.float32)
    adj = a / jnp.sum(a, axis=1, keepdims=True)
    params = (
        init_gc_params(k_p1, n_feat, n_hid),
        init_gc_params(k_p2, n_hid, n_out),
    )
    return x, adj, params


if __name__ == "__main__":
    key = jax.random.PRNGKey(0)
    k_small, k_big = jax.random.split(key)
    dropout = 0.5

    # Case 1: small, module-consistent shapes (single-tile, collapsed-k plan).
    x, adj, params = _make_case(k_small, n_nodes=8, n_feat=16, n_hid=32, n_out=16)
    out = jax.block_until_ready(gcn_forward(x, adj, params, dropout))
    ref = _ref_forward(x, adj, params)
    assert out.shape == (8, 16)
    # bf16 inputs / f32 accumulation vs f32 reference -> loose tolerance.
    assert jnp.allclose(out, ref, atol=3e-2, rtol=3e-2)

    # Case 2: awkward N exercises tight 128-padding (300 -> 384) and the
    # multi-row-tile collapsed plan.
    x2, adj2, params2 = _make_case(k_big, n_nodes=300, n_feat=48, n_hid=64, n_out=24)
    out2 = jax.block_until_ready(gcn_forward(x2, adj2, params2, dropout))
    ref2 = _ref_forward(x2, adj2, params2)
    assert out2.shape == (300, 24)
    assert jnp.allclose(out2, ref2, atol=3e-2, rtol=3e-2)

    # Case 3: force the tiled-reduction plan (resident support + f32 acc
    # scratch) by shrinking the *planning* budget only; the compiler VMEM
    # limit stays at the real generation-derived value.
    out3 = jax.block_until_ready(
        gcn_forward(x2, adj2, params2, dropout, plan_budget=600 * 1024))
    assert out3.shape == (300, 24)
    assert jnp.allclose(out3, ref2, atol=3e-2, rtol=3e-2)

    print("KERNEL_OK")
</pallas_src>

<mosaic_0001>
module attributes {stable_mosaic.version = 11 : i64} {
  func.func @_support_kernel(%arg0: i32, %arg1: memref<128x128xbf16, #tpu.memory_space<vmem>>, %arg2: memref<128x128xbf16, #tpu.memory_space<vmem>>, %arg3: memref<128x128xbf16, #tpu.memory_space<vmem>>) attributes {dimension_semantics = [#tpu.dimension_semantics<parallel>], iteration_bounds = array<i64: 1>, scalar_prefetch = 0 : i64, scratch_operands = 0 : i64, tpu.core_type = #tpu.core_type<tc>, window_params = [{transform_indices = @transform_0, window_bounds = array<i64: 128, 128>}, {pipeline_mode = #tpu.pipeline_mode<synchronous>, transform_indices = @transform_1, window_bounds = array<i64: 128, 128>}, {transform_indices = @transform_2, window_bounds = array<i64: 128, 128>}]} {
    %c0 = arith.constant 0 : index
    %c0_0 = arith.constant 0 : index
    %0 = vector.load %arg1[%c0, %c0_0] : memref<128x128xbf16, #tpu.memory_space<vmem>>, vector<128x128xbf16>
    %c0_1 = arith.constant 0 : index
    %c0_2 = arith.constant 0 : index
    %1 = vector.load %arg2[%c0_1, %c0_2] : memref<128x128xbf16, #tpu.memory_space<vmem>>, vector<128x128xbf16>
    %cst = arith.constant dense<0.000000e+00> : vector<128x128xf32>
    %2 = tpu.matmul %0, %1, %cst {dimension_numbers = #tpu.dot_dimension_numbers<[1], [0], [0], [1], [0, 0, 1, 1], [], []>} : vector<128x128xbf16>, vector<128x128xbf16>, vector<128x128xf32> -> vector<128x128xf32>
    %3 = arith.truncf %2 : vector<128x128xf32> to vector<128x128xbf16>
    %c0_3 = arith.constant 0 : index
    %c0_4 = arith.constant 0 : index
    %4 = vector.load %arg3[%c0_3, %c0_4] : memref<128x128xbf16, #tpu.memory_space<vmem>>, vector<128x128xbf16>
    tpu.vector_store %arg3[%c0_3, %c0_4], %3 {strides = array<i32>} : memref<128x128xbf16, #tpu.memory_space<vmem>>, vector<128x128xbf16>,
    return
  }
  func.func @transform_0(%arg0: i32) -> (i32, i32) {
    %c0_i32 = arith.constant 0 : i32
    %c0_i32_0 = arith.constant 0 : i32
    return %arg0, %c0_i32 : i32, i32
  }
  func.func @transform_1(%arg0: i32) -> (i32, i32) {
    %c0_i32 = arith.constant 0 : i32
    %c0_i32_0 = arith.constant 0 : i32
    %c0_i32_1 = arith.constant 0 : i32
    return %c0_i32, %c0_i32_0 : i32, i32
  }
  func.func @transform_2(%arg0: i32) -> (i32, i32) {
    %c0_i32 = arith.constant 0 : i32
    %c0_i32_0 = arith.constant 0 : i32
    return %arg0, %c0_i32 : i32, i32
  }
}

</mosaic_0001>

<bundles_post_ra>
// kernel: tpu_custom_call.1
= control target key start
LH: loop header
LB: loop body
LE: loop exit
PB: predicated region body
PF: predicated region fallthrough
CT: control target
= control target key end

     0   :  { %7 = vsyncpa [#allocation3], 0  ;;  %s545_s0 = inlined_call_operand.hbm [shape: bf16[128,128], index: 0, kind: input, shape index: {}]   ;;  %s546_s1 = inlined_call_operand.hbm [shape: bf16[128,128], index: 1, kind: input, shape index: {}]   ;;  %s547_s2 = inlined_call_operand.hbm [shape: bf16[128,128], index: 2, kind: output, shape index: {}]  }
   0x1   :  { %8 = vsyncpa [#allocation6], 0 }
   0x2   :  { %9 = vsyncpa [#allocation4], 0  ;;  %s14_s11 = sshll.u32 %s545_s0, 4  ;;  %s507_s12 = smov [#allocation2]   ;;  %s15_s11 = int_to_ptr.hbm [resolvable:$true] %s14_s11 }
   0x3   :  { %s16_s13 = sshll.u32 %s507_s12, 4  ;;  %s27_s16 = sshll.u32 %s546_s1, 4  ;;  %s17_s13 = int_to_ptr.vmem [resolvable:$true] %s16_s13  ;;  %s28_s16 = int_to_ptr.hbm [resolvable:$true] %s27_s16 }
   0x4   :  { %s508_s17 = smov 64   ;;  %s509_s18 = smov 4  }
   0x5   :  { %22 = dma.hbm_to_vmem [thread:$0]  %s15_s11, 1024, %s17_s13, [#allocation3], %s508_s17, %s508_s17, %s509_s18  }
   0x6   :  { %s510_s19 = smov [#allocation5]  }
   0x7   :  { %s29_s20 = sshll.u32 %s510_s19, 4  ;;  %s30_s20 = int_to_ptr.vmem [resolvable:$true] %s29_s20 }
   0x8   :  { %35 = dma.hbm_to_vmem [thread:$0]  %s28_s16, 1024, %s30_s20, [#allocation6], %s508_s17, %s508_s17, %s509_s18  }
   0x9   :  { %501 = dma.done.wait [#allocation3], 1024  }
   0xa   :  { %502 = vsyncadd [#allocation3], 4294966272 }
   0xb   :  { %503 = dma.done.wait [#allocation6], 1024  }
   0xc   :  { %504 = vsyncadd [#allocation6], 4294966272  ;;  %v352_v0 = vld [vmem:[#allocation5 + $0x38] sm:$0xff]  ;;  %v351_v1 = vld [vmem:[#allocation5 + $0x30] sm:$0xff]  ;;  %s511_s0 = smov [#allocation7]   ;;  %s259_s23 = sshll.u32 %s547_s2, 4  ;;  %s260_s23 = int_to_ptr.hbm [resolvable:$true] %s259_s23 }
   0xd   :  { %172 = vmatpush.bf16.msra.mxu0 %v352_v0  ;;  %400 = vmatpush.bf16.msra.mxu1 %v352_v0  ;;  %v350_v2 = vld [vmem:[#allocation5 + $0x28] sm:$0xff]  ;;  %v349_v3 = vld [vmem:[#allocation5 + $0x20] sm:$0xff]  ;;  %v348_v4 = vld [vmem:[#allocation5 + $0x18] sm:$0xff]  ;;  %s257_s1 = sshll.u32 %s511_s0, 4  ;;  %s258_s1 = int_to_ptr.vmem [resolvable:$true] %s257_s1 }
   0xe   :  { %401 = vmatpush.bf16.msra.mxu2 %v352_v0  ;;  %402 = vmatpush.bf16.msra.mxu3 %v352_v0  ;;  %v347_v5 = vld [vmem:[#allocation5 + $0x10] sm:$0xff]  ;;  %v346_v6 = vld [vmem:[#allocation5 + $0x8] sm:$0xff]  ;;  %v345_v7 = vld [vmem:[#allocation5] sm:$0xff] }
   0xf   :  { %v337_v8 = vld [vmem:[#allocation2] sm:$0xff]  ;;  %v339_v9 = vld [vmem:[#allocation2 + $0x10] sm:$0xff]  ;;  %v338_v12 = vld [vmem:[#allocation2 + $0x8] sm:$0xff] }
  0x10   :  { %v341_v10 = vld [vmem:[#allocation2 + $0x20] sm:$0xff]  ;;  %v343_v11 = vld [vmem:[#allocation2 + $0x30] sm:$0xff]  ;;  %v340_v13 = vld [vmem:[#allocation2 + $0x18] sm:$0xff] }
  0x11   :  { %173 = vmatpush.bf16.msra.mxu0 %v351_v1  ;;  %403 = vmatpush.bf16.msra.mxu1 %v351_v1  ;;  %v342_v14 = vld [vmem:[#allocation2 + $0x28] sm:$0xff]  ;;  %v344_v15 = vld [vmem:[#allocation2 + $0x38] sm:$0xff] }
  0x12   :  { %404 = vmatpush.bf16.msra.mxu2 %v351_v1  ;;  %405 = vmatpush.bf16.msra.mxu3 %v351_v1 }
  0x15   :  { %174 = vmatpush.bf16.msra.mxu0 %v350_v2  ;;  %406 = vmatpush.bf16.msra.mxu1 %v350_v2 }
  0x16   :  { %407 = vmatpush.bf16.msra.mxu2 %v350_v2  ;;  %408 = vmatpush.bf16.msra.mxu3 %v350_v2 }
  0x19   :  { %175 = vmatpush.bf16.msra.mxu0 %v349_v3  ;;  %409 = vmatpush.bf16.msra.mxu1 %v349_v3 }
  0x1a   :  { %410 = vmatpush.bf16.msra.mxu2 %v349_v3  ;;  %411 = vmatpush.bf16.msra.mxu3 %v349_v3 }
  0x1d   :  { %176 = vmatpush.bf16.msra.mxu0 %v348_v4  ;;  %412 = vmatpush.bf16.msra.mxu1 %v348_v4 }
  0x1e   :  { %413 = vmatpush.bf16.msra.mxu2 %v348_v4  ;;  %414 = vmatpush.bf16.msra.mxu3 %v348_v4 }
  0x21   :  { %177 = vmatpush.bf16.msra.mxu0 %v347_v5  ;;  %415 = vmatpush.bf16.msra.mxu1 %v347_v5 }
  0x22   :  { %416 = vmatpush.bf16.msra.mxu2 %v347_v5  ;;  %417 = vmatpush.bf16.msra.mxu3 %v347_v5 }
  0x25   :  { %178 = vmatpush.bf16.msra.mxu0 %v346_v6  ;;  %418 = vmatpush.bf16.msra.mxu1 %v346_v6 }
  0x26   :  { %419 = vmatpush.bf16.msra.mxu2 %v346_v6  ;;  %420 = vmatpush.bf16.msra.mxu3 %v346_v6 }
  0x29   :  { %179 = vmatpush.bf16.msra.mxu0 %v345_v7  ;;  %421 = vmatpush.bf16.msra.mxu1 %v345_v7 }
  0x2a   :  { %422 = vmatpush.bf16.msra.mxu2 %v345_v7  ;;  %423 = vmatpush.bf16.msra.mxu3 %v345_v7 }
  0x2c   :  { %180 = vmatmul.bf16.vlgmr.msra.gmra.mxu0 %v337_v8  ;;  %190 = vmatmul.bf16.vlgmr.msra.gmra.mxu1 %v339_v9 }
  0x2d   :  { %200 = vmatmul.bf16.vlgmr.msra.gmra.mxu2 %v341_v10  ;;  %210 = vmatmul.bf16.vlgmr.msra.gmra.mxu3 %v343_v11 }
  0x3c   :  { %185 = vmatmul.bf16.gmra.mxu0 %v338_v12  ;;  %195 = vmatmul.bf16.gmra.mxu1 %v340_v13 }
  0x3d   :  { %205 = vmatmul.bf16.gmra.mxu2 %v342_v14  ;;  %215 = vmatmul.bf16.gmra.mxu3 %v344_v15 }
  0xa9   :  { %v181_v16 = vpop.f32.mrf.mxu0  ;;  %v191_v17 = vpop.f32.mrf.mxu1 }
  0xb0   :  { %v201_v18 = vpop.f32.mrf.mxu2  ;;  %v211_v19 = vpop.f32.mrf.mxu3 }
  0xb1   :  { %v183_v20 = vpop.f32.mrf.mxu0  ;;  %v193_v21 = vpop.f32.mrf.mxu1 }
  0xb2   :  { %v356_v22 = vpack.c.bf16 %v183_v20, %v181_v16  ;;  %v366_v23 = vpack.c.bf16 %v193_v21, %v191_v17 }
  0xb4   :  { %357 = vst [vmem:[#allocation7] sm:$0xff] %v356_v22  }
  0xb5   :  { %394 = vst [vmem:[#allocation7 + $0x10] sm:$0xff] %v366_v23  }
  0xb8   :  { %v203_v24 = vpop.f32.mrf.mxu2  ;;  %v213_v25 = vpop.f32.mrf.mxu3 }
  0xb9   :  { %v376_v26 = vpack.c.bf16 %v203_v24, %v201_v18  ;;  %v386_v27 = vpack.c.bf16 %v213_v25, %v211_v19  ;;  %v186_v28 = vpop.f32.mrf.mxu0  ;;  %v196_v29 = vpop.f32.mrf.mxu1 }
  0xbb   :  { %396 = vst [vmem:[#allocation7 + $0x20] sm:$0xff] %v376_v26  }
  0xbc   :  { %398 = vst [vmem:[#allocation7 + $0x30] sm:$0xff] %v386_v27  }
  0xc0   :  { %v206_v30 = vpop.f32.mrf.mxu2  ;;  %v216_v31 = vpop.f32.mrf.mxu3 }
  0xc1   :  { %v188_v32 = vpop.f32.mrf.mxu0  ;;  %v198_v33 = vpop.f32.mrf.mxu1 }
  0xc2   :  { %v361_v34 = vpack.c.bf16 %v188_v32, %v186_v28  ;;  %v371_v35 = vpack.c.bf16 %v198_v33, %v196_v29 }
  0xc4   :  { %393 = vst [vmem:[#allocation7 + $0x8] sm:$0xff] %v361_v34  }
  0xc5   :  { %395 = vst [vmem:[#allocation7 + $0x18] sm:$0xff] %v371_v35  }
  0xc8   :  { %v208_v36 = vpop.f32.mrf.mxu2  ;;  %v218_v37 = vpop.f32.mrf.mxu3 }
  0xc9   :  { %v381_v38 = vpack.c.bf16 %v208_v36, %v206_v30  ;;  %v391_v39 = vpack.c.bf16 %v218_v37, %v216_v31 }
  0xcb   :  { %397 = vst [vmem:[#allocation7 + $0x28] sm:$0xff] %v381_v38  }
  0xcc   :  { %399 = vst [vmem:[#allocation7 + $0x38] sm:$0xff] %v391_v39  }
  0xcd   :  { %265 = dma.vmem_to_hbm [thread:$0]  %s258_s1, 1024, %s260_s23, [#allocation4], %s508_s17, %s508_s17, %s509_s18  }
  0xce   :  { %505 = dma.done.wait [#allocation4], 1024  }
  0xcf   :  { %506 = vsyncadd [#allocation4], 4294966272 }
  0xd0   :  { %270 = vsyncpa [#allocation3], 1 }
  0xd1   :  { %271 = vsyncpa [#allocation6], 1 }
  0xd2   :  { %272 = vsyncpa [#allocation4], 1 }

</bundles_post_ra>
